<compile_context>
chip_gen: v7x
topology: tpu7x:2x2x1
jax: 0.10.0
libtpu: 0.0.40
codegen_flags: <defaults>
</compile_context>

<pallas_src>
import jax
import jax.numpy as jnp
from jax.experimental import pallas as pl
from jax.experimental.pallas import tpu as pltpu


def _round_up(n: int, m: int) -> int:
    return ((n + m - 1) // m) * m


def logreg_kernel(x_ref, w_ref, b_ref, o_ref):
    # x_ref: [TB, F] (VMEM), w_ref: [1, F] (VMEM), b_ref: [1, 1] (SMEM), o_ref: [TB, 1]
    x = x_ref[...]
    w = w_ref[...]                                    # [1, F] broadcasts over rows (VPU)
    b = b_ref[0, 0]                                   # scalar read from SMEM
    z = jnp.sum(x * w, axis=-1, keepdims=True) + b    # VPU multiply + XLU lane reduce
    o_ref[...] = jax.nn.sigmoid(z).astype(o_ref.dtype)


def _logreg_pallas(x, weight, bias, block_b: int):
    B, F = x.shape

    # Big batch tile (amortizes per-step overhead) but keep >= 2 grid steps when B
    # allows, so the parallel batch axis can be sharded across TensorCores (v7x).
    tb = max(8, _round_up(pl.cdiv(B, 2), 8))
    tb = min(tb, block_b, _round_up(B, 8))
    grid = (pl.cdiv(B, tb),)

    # Lane-padded VMEM tiles: (tb, F) and (tb, 1) each occupy tb*128*4 bytes, x2 for
    # double buffering.  Set the scoped VMEM limit explicitly (v5e default is 16 MiB).
    tile_bytes = tb * 128 * 4
    vmem_limit = int(min(max(4 * tile_bytes + (2 << 20), 16 << 20), 48 << 20))

    w_row = weight.astype(jnp.float32)                # [1, F] lane-major weight row
    b_smem = bias.reshape(1, 1).astype(jnp.float32)   # scalar bias for SMEM

    cost = pl.CostEstimate(
        flops=2 * B * F,
        transcendentals=B,
        bytes_accessed=B * F * 4 + B * 4 + F * 4,
    )

    return pl.pallas_call(
        logreg_kernel,
        out_shape=jax.ShapeDtypeStruct((B, 1), jnp.float32),
        grid=grid,
        in_specs=[
            pl.BlockSpec((tb, F), lambda i: (i, 0)),            # x batch tile
            pl.BlockSpec((1, F), lambda i: (0, 0)),             # weight row (resident)
            pl.BlockSpec(memory_space=pltpu.MemorySpace.SMEM),  # scalar bias
        ],
        out_specs=pl.BlockSpec((tb, 1), lambda i: (i, 0)),
        compiler_params=pltpu.CompilerParams(
            dimension_semantics=("parallel",),
            vmem_limit_bytes=vmem_limit,
        ),
        cost_estimate=cost,
    )(x, w_row, b_smem)


def logistic_regression(x, weight, bias, *, block_b: int = 8192,
                        min_pallas_batch: int = 16384):
    """sigmoid(x @ weight.T + bias).

    x:      [B, F] float32
    weight: [1, F] float32   (torch.nn.Linear weight layout, lane-major)
    bias:   [1]    float32
    returns [B, 1] float32
    """
    B, F = x.shape
    assert weight.shape == (1, F)
    x = x.astype(jnp.float32)

    if B < min_pallas_batch:
        # Small-batch bypass: plain fused XLA matvec beats Pallas launch overhead.
        return jax.nn.sigmoid(
            x @ weight.astype(jnp.float32).T + bias.astype(jnp.float32))

    return _logreg_pallas(x, weight, bias, block_b)


if __name__ == "__main__":
    key = jax.random.PRNGKey(0)
    kx, kw, kb, kx2 = jax.random.split(key, 4)

    F = 13  # torch_trn_m - 2 for the heart-disease table

    # Deterministic "Linear(13, 1)" params (torch layout: weight [1, F], bias [1]).
    bound = 1.0 / jnp.sqrt(jnp.float32(F))
    weight = jax.random.uniform(kw, (1, F), jnp.float32, minval=-bound, maxval=bound)
    bias = jax.random.uniform(kb, (1,), jnp.float32, minval=-bound, maxval=bound)

    # Small batch: force the Pallas path (single grid step, 8-row tile).
    B = 8
    x = jax.random.normal(kx, (B, F), dtype=jnp.float32)
    y = logistic_regression(x, weight, bias, min_pallas_batch=0)
    jax.block_until_ready(y)
    y_ref = jax.nn.sigmoid(x @ weight.T + bias)
    assert y.shape == (B, 1)
    assert jnp.allclose(y, y_ref, atol=1e-6), "mismatch vs reference (small batch)"

    # Larger batch: force Pallas, exercises the >=2-step grid and the partial last
    # block (1000 rows -> two 504-row tiles, second one clipped at 496 valid rows).
    B2 = 1000
    x2 = jax.random.normal(kx2, (B2, F), dtype=jnp.float32)
    y2 = logistic_regression(x2, weight, bias, min_pallas_batch=0)
    jax.block_until_ready(y2)
    y2_ref = jax.nn.sigmoid(x2 @ weight.T + bias)
    assert y2.shape == (B2, 1)
    assert jnp.allclose(y2, y2_ref, atol=1e-6), "mismatch vs reference (large batch)"

    # Default entry point (small-batch bypass path) must agree too.
    y3 = logistic_regression(x2, weight, bias)
    jax.block_until_ready(y3)
    assert jnp.allclose(y3, y2_ref, atol=1e-6), "mismatch vs reference (bypass)"

    print("KERNEL_OK")
</pallas_src>

<mosaic_0001>
module attributes {stable_mosaic.version = 11 : i64} {
  func.func @logreg_kernel(%arg0: i32, %arg1: memref<8x13xf32, #tpu.memory_space<vmem>>, %arg2: memref<1x13xf32, #tpu.memory_space<vmem>>, %arg3: memref<1x1xf32, #tpu.memory_space<smem>>, %arg4: memref<8x1xf32, #tpu.memory_space<vmem>>) attributes {dimension_semantics = [#tpu.dimension_semantics<parallel>], iteration_bounds = array<i64: 1>, scalar_prefetch = 0 : i64, scratch_operands = 0 : i64, tpu.core_type = #tpu.core_type<tc>, window_params = [{transform_indices = @transform_0, window_bounds = array<i64: 8, 13>}, {pipeline_mode = #tpu.pipeline_mode<synchronous>, transform_indices = @transform_1, window_bounds = array<i64: 1, 13>}, {transform_indices = @transform_2, window_bounds = array<i64: 1, 1>}, {transform_indices = @transform_3, window_bounds = array<i64: 8, 1>}]} {
    %c0 = arith.constant 0 : index
    %c0_0 = arith.constant 0 : index
    %0 = vector.load %arg1[%c0, %c0_0] : memref<8x13xf32, #tpu.memory_space<vmem>>, vector<8x13xf32>
    %c0_1 = arith.constant 0 : index
    %c0_2 = arith.constant 0 : index
    %1 = vector.load %arg2[%c0_1, %c0_2] : memref<1x13xf32, #tpu.memory_space<vmem>>, vector<1x13xf32>
    %c0_3 = arith.constant 0 : index
    %c0_4 = arith.constant 0 : index
    %2 = memref.load %arg3[%c0_3, %c0_4] : memref<1x1xf32, #tpu.memory_space<smem>>
    %3 = vector.broadcast %1 : vector<1x13xf32> to vector<8x13xf32>
    %4 = arith.mulf %0, %3 : vector<8x13xf32>
    %cst = arith.constant dense<0.000000e+00> : vector<8xf32>
    %5 = vector.multi_reduction <add>, %4, %cst [1] : vector<8x13xf32> to vector<8xf32>
    %6 = vector.shape_cast %5 : vector<8xf32> to vector<8x1xf32>
    %7 = vector.broadcast %2 : f32 to vector<8x1xf32>
    %8 = arith.addf %6, %7 : vector<8x1xf32>
    %9 = arith.negf %8 : vector<8x1xf32>
    %10 = math.exp %9 : vector<8x1xf32>
    %cst_5 = arith.constant 1.000000e+00 : f32
    %11 = vector.broadcast %cst_5 : f32 to vector<8x1xf32>
    %12 = arith.addf %11, %10 : vector<8x1xf32>
    %13 = arith.divf %11, %12 : vector<8x1xf32>
    %c0_6 = arith.constant 0 : index
    %c0_7 = arith.constant 0 : index
    %14 = vector.load %arg4[%c0_6, %c0_7] : memref<8x1xf32, #tpu.memory_space<vmem>>, vector<8x1xf32>
    tpu.vector_store %arg4[%c0_6, %c0_7], %13 {strides = array<i32>} : memref<8x1xf32, #tpu.memory_space<vmem>>, vector<8x1xf32>,
    return
  }
  func.func @transform_0(%arg0: i32) -> (i32, i32) {
    %c0_i32 = arith.constant 0 : i32
    %c0_i32_0 = arith.constant 0 : i32
    return %arg0, %c0_i32 : i32, i32
  }
  func.func @transform_1(%arg0: i32) -> (i32, i32) {
    %c0_i32 = arith.constant 0 : i32
    %c0_i32_0 = arith.constant 0 : i32
    %c0_i32_1 = arith.constant 0 : i32
    return %c0_i32, %c0_i32_0 : i32, i32
  }
  func.func @transform_2(%arg0: i32) -> (i32, i32) {
    %c0_i32 = arith.constant 0 : i32
    %c0_i32_0 = arith.constant 0 : i32
    %c0_i32_1 = arith.constant 0 : i32
    return %c0_i32, %c0_i32_0 : i32, i32
  }
  func.func @transform_3(%arg0: i32) -> (i32, i32) {
    %c0_i32 = arith.constant 0 : i32
    %c0_i32_0 = arith.constant 0 : i32
    return %arg0, %c0_i32 : i32, i32
  }
}

</mosaic_0001>

<bundles_post_ra>
// kernel: tpu_custom_call.1
= control target key start
LH: loop header
LB: loop body
LE: loop exit
PB: predicated region body
PF: predicated region fallthrough
CT: control target
= control target key end

     0   :  { %9 = vsyncpa [#allocation4], 0  ;;  %s87_s12 = smov [#allocation3]   ;;  %s129_s0 = inlined_call_operand.hbm [shape: f32[8,13], index: 0, kind: input, shape index: {}]   ;;  %s130_s1 = inlined_call_operand.vmem [shape: f32[1,13], index: 1, kind: input, shape index: {}]   ;;  %s131_s2 = inlined_call_operand.<no memory space> [shape: f32[1,1], index: 2, kind: input, shape index: {}]   ;;  %s132_s3 = inlined_call_operand.vmem [shape: f32[8,1], index: 3, kind: output, shape index: {}]  }
   0x1   :  { %s16_s13 = sshll.u32 %s87_s12, 4  ;;  %s63_s16 = scalar_lea.hbm %s129_s0, 128  ;;  %s17_s13 = int_to_ptr.vmem [resolvable:$true] %s16_s13 }
   0x2   :  { %p64_p0 = scmp.ne.s32.totalorder %s129_s0, %s63_s16  ;;  %p67_p1 = scmp.lt.u32.totalorder %s63_s16, %s129_s0 }
   0x4   :  { %p69_p2 = pnand %p67_p1, %p64_p0 }
   0x6   :  { %72 = shalt.err (!%p69_p2)
}
   0x7   :  { %s73_s21 = scalar_lea.vmem %s17_s13, 128  ;;  %p78_p4 = scmp.lt.s32.totalorder %s17_s13, %s17_s13 }
   0x8   :  { %p74_p3 = scmp.ne.s32.totalorder %s17_s13, %s73_s21  ;;  %p79_p5 = scmp.lt.s32.totalorder %s73_s21, %s73_s21 }
   0xa   :  { %p80_p6 = por %p79_p5, %p78_p4 }
   0xc   :  { %p81_p7 = pnand %p80_p6, %p74_p3 }
   0xe   :  { %84 = shalt.err (!%p81_p7)
}
   0xf   :  { %19 = dma.hbm_to_vmem [thread:$0]  %s129_s0, 128, %s17_s13, [#allocation4]  }
  0x10   :  { %85 = dma.done.wait [#allocation4], 128  }
  0x11   :  { %86 = vsyncadd [#allocation4], 4294967168  ;;  %v27_v0 = vld [vmem:[#allocation3] sm:$0xff]  ;;  %vm37_vm0 = vcmask 105472   ;;  %v41_v4 = vstv %s131_s2  ;;  %vm49_vm1 = vcmask 7168  }
  0x12   :  { %v56_v1 = vld [vmem:[%s130_s1] ss:$0 sm:$0xff] }
  0x13   :  { %v36_v2 = vmul.f32 %v56_v1, %v27_v0 }
  0x15   :  { %v38_v3 = vsel %vm37_vm0, %v36_v2, 0.0 }
  0x16   :  { %39 = vadd.xlane.f32.xlu0 %v38_v3 }
  0xa3   :  { %v40_v5 = vpop.xlane.xlu0 %39 }
  0xa4   :  { %v42_v6 = vadd.f32 %v41_v4, %v40_v5 }
  0xa6   :  { %v57_v7 = vmul.f32 -1.442695, %v42_v6 }
  0xa8   :  { %59 = vpow2.f32 %v57_v7 }
  0xb2   :  { %v60_v8 = vpop.eup %59 }
  0xb3   :  { %v46_v9 = vadd.f32 1.0, %v60_v8 }
  0xb5   :  { %61 = vrcp.f32 %v46_v9 }
  0xbf   :  { %v62_v10 = vpop.eup %61 }
  0xc0   :  { %50 = vst.msk [vmem:[%s132_s3] sm:$0xff] %vm49_vm1, %v62_v10 }
  0xc1   :  { %55 = vsyncpa [#allocation4], 1 }

</bundles_post_ra>
